<compile_context>
chip_gen: v7x
topology: tpu7x:2x2x1
jax: 0.10.0
libtpu: 0.0.40
codegen_flags: <defaults>
</compile_context>

<pallas_src>
import jax
import jax.numpy as jnp
from jax.experimental import pallas as pl
from jax.experimental.pallas import tpu as pltpu


def _ffn_kernel(x_ref, w1_ref, b1_ref, w2_ref, b2_ref, o_ref, acc_ref):
    # x_ref:  [TM, d_model]
    # w1_ref: [d_model, TK]       b1_ref: [num_chunks, TK]  (fully resident)
    # w2_ref: [TK, d_model]       b2_ref: [1, d_model]      (fully resident)
    # o_ref:  [TM, d_model]       acc_ref (scratch): [TM, d_model] f32
    k = pl.program_id(1)

    @pl.when(k == 0)
    def _init():
        acc_ref[...] = jnp.zeros_like(acc_ref)

    # First linear for this d_ff chunk (MXU, f32 accumulation).
    h = jnp.dot(x_ref[...], w1_ref[...], preferred_element_type=jnp.float32)
    # Bias (row k of the resident b1 table) + ReLU.  Dropout == identity.
    h = jnp.maximum(h + b1_ref[pl.ds(k, 1), :], 0.0)
    # Second linear partial product accumulated into the resident f32 scratch.
    # Cast h to the weight dtype only now (bf16 weights -> bf16 MXU operands).
    acc_ref[...] += jnp.dot(h.astype(w2_ref.dtype), w2_ref[...],
                            preferred_element_type=jnp.float32)

    @pl.when(k == pl.num_programs(1) - 1)
    def _finalize():
        # b2 is added exactly once, on the final d_ff chunk.
        o_ref[...] = (acc_ref[...] + b2_ref[...]).astype(o_ref.dtype)


def _detect_big_vmem():
    """True on 128-MiB-VMEM parts (v5e / v6e); False on v7x or unknown."""
    try:
        cap = getattr(pltpu.get_tpu_info(), "vmem_capacity_bytes", None)
        if cap is not None:
            return cap >= 96 * 1024 * 1024
    except Exception:
        pass
    try:
        kind = jax.devices()[0].device_kind.lower()
        return ("v5" in kind) or ("v6" in kind)
    except Exception:
        return False


def _pick_token_tile(n, desired):
    """Full N for small inputs; otherwise the desired 128-aligned tile.

    The last token tile may be ragged: Pallas masks the partial output write,
    and garbage tail input rows only affect tail output rows (row-wise
    independence), so no host-side padding pass is needed."""
    return n if n <= desired else desired


def _pick_ff_tile(d_ff, desired):
    """d_ff chunk: must divide d_ff exactly (garbage on the reduction axis
    would contaminate every output row) and be a multiple of 128 (lane rule)
    unless it equals d_ff.  Prefer 256-aligned chunks (256x256 MXU)."""
    if d_ff <= desired:
        return d_ff
    for align in (256, 128):
        t = (desired // align) * align
        while t >= align:
            if d_ff % t == 0:
                return t
            t -= align
    # No aligned divisor: fall back to the full d_ff (footprint check below
    # then shrinks TM; consider padding d_ff upstream for odd sizes).
    return d_ff


def _vmem_footprint(tm, tk, d_model, d_ff, x_b, w_b, o_b):
    nk = max(1, d_ff // tk)
    return (2 * tm * d_model * x_b           # x tile (double-buffered)
            + 2 * d_model * tk * w_b         # w1 chunk (double-buffered)
            + 2 * tk * d_model * w_b         # w2 chunk (double-buffered)
            + 2 * tm * d_model * o_b         # out tile (conservative 2 bufs)
            + tm * d_model * 4               # f32 accumulator scratch
            + 2 * nk * tk * w_b              # resident b1 table
            + 2 * d_model * w_b)             # resident b2


def _plan_tiles(n, d_model, d_ff, x_dtype, w_dtype, out_dtype):
    x_b = jnp.dtype(x_dtype).itemsize
    w_b = jnp.dtype(w_dtype).itemsize
    o_b = jnp.dtype(out_dtype).itemsize

    if _detect_big_vmem():            # v5e / v6e: 128 MiB physical VMEM
        tm_desired, tk_desired = 1024, 1024
        vmem_limit = 100 * 1024 * 1024
    else:                             # v7x (64 MiB per core) or unknown
        tm_desired, tk_desired = 768, 512
        vmem_limit = 52 * 1024 * 1024

    tm = _pick_token_tile(n, tm_desired)
    tk = _pick_ff_tile(d_ff, tk_desired)

    budget = int(vmem_limit * 0.85)   # headroom for compiler-internal scratch
    while _vmem_footprint(tm, tk, d_model, d_ff, x_b, w_b, o_b) > budget:
        # Shrink the d_ff chunk first (only weight buffers shrink); TM is the
        # arithmetic-intensity lever, so it is shrunk last.
        if (tk > 256 and tk % 2 == 0 and (tk // 2) % 128 == 0
                and d_ff % (tk // 2) == 0):
            tk //= 2
        elif tm > 256:
            tm = max(256, tm // 2)
        else:
            break
    return tm, tk, vmem_limit


def positionwise_ffn(x, w1_io, b1, w2_io, b2):
    """FFN forward: relu(x @ w1_io + b1) @ w2_io + b2 (dropout = identity).

    x:     [batch, seq, d_model]
    w1_io: [d_model, d_ff]  (pre-transposed once at parameter-prep time)
    b1:    [d_ff]
    w2_io: [d_ff, d_model]  (pre-transposed once at parameter-prep time)
    b2:    [d_model]
    """
    batch, seq, d_model = x.shape
    d_ff = w1_io.shape[1]
    n = batch * seq

    tm, tk, vmem_limit = _plan_tiles(n, d_model, d_ff,
                                     x.dtype, w1_io.dtype, x.dtype)

    # No host-side padding pass over x; the ragged tail block is masked.
    x2d = x.reshape(n, d_model)
    num_chunks = d_ff // tk
    b1_2d = b1.reshape(num_chunks, tk)      # resident bias table (tiny)
    b2_2d = b2.reshape(1, d_model)

    grid = (pl.cdiv(n, tm), num_chunks)

    x_b = jnp.dtype(x.dtype).itemsize
    w_b = jnp.dtype(w1_io.dtype).itemsize
    cost = pl.CostEstimate(
        flops=4 * n * d_model * d_ff,                          # two matmuls
        transcendentals=0,
        bytes_accessed=(n * d_model * 2 * x_b                  # x in + y out
                        + 2 * grid[0] * d_model * d_ff * w_b   # w1+w2 restream
                        + (d_ff + d_model) * w_b),             # biases
    )

    out2d = pl.pallas_call(
        _ffn_kernel,
        out_shape=jax.ShapeDtypeStruct((n, d_model), x.dtype),
        grid_spec=pltpu.PrefetchScalarGridSpec(
            num_scalar_prefetch=0,
            grid=grid,
            in_specs=[
                # x tile: new token tile per i, constant (resident) across k.
                pl.BlockSpec((tm, d_model), lambda i, k: (i, 0)),
                # w1 chunk [d_model, TK]: streamed along k, shared across i.
                pl.BlockSpec((d_model, tk), lambda i, k: (0, k)),
                # b1 table [num_chunks, TK]: fully resident, sliced in-kernel.
                pl.BlockSpec((num_chunks, tk), lambda i, k: (0, 0)),
                # w2 chunk [TK, d_model]: streamed along k, shared across i.
                pl.BlockSpec((tk, d_model), lambda i, k: (k, 0)),
                # b2 [1, d_model]: fully resident.
                pl.BlockSpec((1, d_model), lambda i, k: (0, 0)),
            ],
            # Same output block across k -> resident accumulator tile; written
            # back to HBM only when the token-tile index changes.
            out_specs=pl.BlockSpec((tm, d_model), lambda i, k: (i, 0)),
            scratch_shapes=[pltpu.VMEM((tm, d_model), jnp.float32)],
        ),
        compiler_params=pltpu.CompilerParams(
            # Token axis parallel (megacore sharding); d_ff axis is the
            # reduction.  On v7x each core re-streams w1/w2, but the large
            # per-core TM keeps the chip MXU-bound regardless.
            dimension_semantics=("parallel", "arbitrary"),
            vmem_limit_bytes=vmem_limit,
        ),
        cost_estimate=cost,
    )(x2d, w1_io, b1_2d, w2_io, b2_2d)

    return out2d.reshape(batch, seq, d_model)


if __name__ == "__main__":
    batch, seq, d_model, d_ff = 2, 8, 32, 64

    key = jax.random.PRNGKey(0)
    kx, kw1, kb1, kw2, kb2 = jax.random.split(key, 5)

    x = jax.random.normal(kx, (batch, seq, d_model), dtype=jnp.float32)
    # PyTorch nn.Linear weight layout: [out, in].
    w1 = jax.random.normal(kw1, (d_ff, d_model), dtype=jnp.float32) * 0.1
    b1 = jax.random.normal(kb1, (d_ff,), dtype=jnp.float32) * 0.1
    w2 = jax.random.normal(kw2, (d_model, d_ff), dtype=jnp.float32) * 0.1
    b2 = jax.random.normal(kb2, (d_model,), dtype=jnp.float32) * 0.1

    # One-time parameter prep (not per call): store weights as [in, out].
    w1_io = jnp.asarray(w1.T)   # [d_model, d_ff]
    w2_io = jnp.asarray(w2.T)   # [d_ff, d_model]

    out = positionwise_ffn(x, w1_io, b1, w2_io, b2)
    jax.block_until_ready(out)

    # Pure-JAX reference (eval-mode dropout == identity).
    ref = jnp.maximum(x @ w1.T + b1, 0.0) @ w2.T + b2
    assert out.shape == (batch, seq, d_model)
    assert jnp.allclose(out, ref, atol=1e-4, rtol=1e-4)

    print("KERNEL_OK")
</pallas_src>

<mosaic_0001>
module attributes {stable_mosaic.version = 11 : i64} {
  func.func @_ffn_kernel(%arg0: i32, %arg1: i32, %arg2: memref<16x32xf32, #tpu.memory_space<vmem>>, %arg3: memref<32x64xf32, #tpu.memory_space<vmem>>, %arg4: memref<1x64xf32, #tpu.memory_space<vmem>>, %arg5: memref<64x32xf32, #tpu.memory_space<vmem>>, %arg6: memref<1x32xf32, #tpu.memory_space<vmem>>, %arg7: memref<16x32xf32, #tpu.memory_space<vmem>>, %arg8: memref<16x32xf32, #tpu.memory_space<vmem>>) attributes {dimension_semantics = [#tpu.dimension_semantics<parallel>, #tpu.dimension_semantics<arbitrary>], iteration_bounds = array<i64: 1, 1>, scalar_prefetch = 0 : i64, scratch_operands = 1 : i64, tpu.core_type = #tpu.core_type<tc>, window_params = [{transform_indices = @transform_0, window_bounds = array<i64: 16, 32>}, {transform_indices = @transform_1, window_bounds = array<i64: 32, 64>}, {pipeline_mode = #tpu.pipeline_mode<synchronous>, transform_indices = @transform_2, window_bounds = array<i64: 1, 64>}, {transform_indices = @transform_3, window_bounds = array<i64: 64, 32>}, {pipeline_mode = #tpu.pipeline_mode<synchronous>, transform_indices = @transform_4, window_bounds = array<i64: 1, 32>}, {transform_indices = @transform_5, window_bounds = array<i64: 16, 32>}]} {
    %c0_i32 = arith.constant 0 : i32
    %0 = arith.cmpi eq, %arg1, %c0_i32 : i32
    %1 = arith.extui %0 : i1 to i32
    %c0_i32_0 = arith.constant 0 : i32
    %2 = arith.cmpi ne, %1, %c0_i32_0 : i32
    scf.if %2 {
      %cst_15 = arith.constant 0.000000e+00 : f32
      %20 = vector.broadcast %cst_15 : f32 to vector<16x32xf32>
      %c0_16 = arith.constant 0 : index
      %c0_17 = arith.constant 0 : index
      %21 = vector.load %arg8[%c0_16, %c0_17] : memref<16x32xf32, #tpu.memory_space<vmem>>, vector<16x32xf32>
      tpu.vector_store %arg8[%c0_16, %c0_17], %20 {strides = array<i32>} : memref<16x32xf32, #tpu.memory_space<vmem>>, vector<16x32xf32>,
    } else {
    }
    %c0 = arith.constant 0 : index
    %c0_1 = arith.constant 0 : index
    %3 = vector.load %arg2[%c0, %c0_1] : memref<16x32xf32, #tpu.memory_space<vmem>>, vector<16x32xf32>
    %c0_2 = arith.constant 0 : index
    %c0_3 = arith.constant 0 : index
    %4 = vector.load %arg3[%c0_2, %c0_3] : memref<32x64xf32, #tpu.memory_space<vmem>>, vector<32x64xf32>
    %cst = arith.constant dense<0.000000e+00> : vector<16x64xf32>
    %5 = tpu.matmul %3, %4, %cst {dimension_numbers = #tpu.dot_dimension_numbers<[1], [0], [0], [1], [0, 0, 1, 1], [], []>} : vector<16x32xf32>, vector<32x64xf32>, vector<16x64xf32> -> vector<16x64xf32>
    %6 = arith.index_cast %arg1 : i32 to index
    %c0_4 = arith.constant 0 : index
    %7 = vector.load %arg4[%6, %c0_4] : memref<1x64xf32, #tpu.memory_space<vmem>>, vector<1x64xf32>
    %8 = vector.broadcast %7 : vector<1x64xf32> to vector<16x64xf32>
    %9 = arith.addf %5, %8 : vector<16x64xf32>
    %cst_5 = arith.constant 0.000000e+00 : f32
    %10 = vector.broadcast %cst_5 : f32 to vector<16x64xf32>
    %11 = arith.maximumf %9, %10 : vector<16x64xf32>
    %c0_6 = arith.constant 0 : index
    %c0_7 = arith.constant 0 : index
    %12 = vector.load %arg8[%c0_6, %c0_7] : memref<16x32xf32, #tpu.memory_space<vmem>>, vector<16x32xf32>
    %c0_8 = arith.constant 0 : index
    %c0_9 = arith.constant 0 : index
    %13 = vector.load %arg5[%c0_8, %c0_9] : memref<64x32xf32, #tpu.memory_space<vmem>>, vector<64x32xf32>
    %cst_10 = arith.constant dense<0.000000e+00> : vector<16x32xf32>
    %14 = tpu.matmul %11, %13, %cst_10 {dimension_numbers = #tpu.dot_dimension_numbers<[1], [0], [0], [1], [0, 0, 1, 1], [], []>} : vector<16x64xf32>, vector<64x32xf32>, vector<16x32xf32> -> vector<16x32xf32>
    %15 = arith.addf %12, %14 : vector<16x32xf32>
    %c0_11 = arith.constant 0 : index
    %c0_12 = arith.constant 0 : index
    %16 = vector.load %arg8[%c0_11, %c0_12] : memref<16x32xf32, #tpu.memory_space<vmem>>, vector<16x32xf32>
    tpu.vector_store %arg8[%c0_11, %c0_12], %15 {strides = array<i32>} : memref<16x32xf32, #tpu.memory_space<vmem>>, vector<16x32xf32>,
    %c0_i32_13 = arith.constant 0 : i32
    %17 = arith.cmpi eq, %arg1, %c0_i32_13 : i32
    %18 = arith.extui %17 : i1 to i32
    %c0_i32_14 = arith.constant 0 : i32
    %19 = arith.cmpi ne, %18, %c0_i32_14 : i32
    scf.if %19 {
      %c0_15 = arith.constant 0 : index
      %c0_16 = arith.constant 0 : index
      %20 = vector.load %arg8[%c0_15, %c0_16] : memref<16x32xf32, #tpu.memory_space<vmem>>, vector<16x32xf32>
      %c0_17 = arith.constant 0 : index
      %c0_18 = arith.constant 0 : index
      %21 = vector.load %arg6[%c0_17, %c0_18] : memref<1x32xf32, #tpu.memory_space<vmem>>, vector<1x32xf32>
      %22 = vector.broadcast %21 : vector<1x32xf32> to vector<16x32xf32>
      %23 = arith.addf %20, %22 : vector<16x32xf32>
      %c0_19 = arith.constant 0 : index
      %c0_20 = arith.constant 0 : index
      %24 = vector.load %arg7[%c0_19, %c0_20] : memref<16x32xf32, #tpu.memory_space<vmem>>, vector<16x32xf32>
      tpu.vector_store %arg7[%c0_19, %c0_20], %23 {strides = array<i32>} : memref<16x32xf32, #tpu.memory_space<vmem>>, vector<16x32xf32>,
    } else {
    }
    return
  }
  func.func @transform_0(%arg0: i32, %arg1: i32) -> (i32, i32) {
    %c0_i32 = arith.constant 0 : i32
    %c0_i32_0 = arith.constant 0 : i32
    return %arg0, %c0_i32 : i32, i32
  }
  func.func @transform_1(%arg0: i32, %arg1: i32) -> (i32, i32) {
    %c0_i32 = arith.constant 0 : i32
    %c0_i32_0 = arith.constant 0 : i32
    return %c0_i32, %arg1 : i32, i32
  }
  func.func @transform_2(%arg0: i32, %arg1: i32) -> (i32, i32) {
    %c0_i32 = arith.constant 0 : i32
    %c0_i32_0 = arith.constant 0 : i32
    %c0_i32_1 = arith.constant 0 : i32
    return %c0_i32, %c0_i32_0 : i32, i32
  }
  func.func @transform_3(%arg0: i32, %arg1: i32) -> (i32, i32) {
    %c0_i32 = arith.constant 0 : i32
    %c0_i32_0 = arith.constant 0 : i32
    return %arg1, %c0_i32 : i32, i32
  }
  func.func @transform_4(%arg0: i32, %arg1: i32) -> (i32, i32) {
    %c0_i32 = arith.constant 0 : i32
    %c0_i32_0 = arith.constant 0 : i32
    %c0_i32_1 = arith.constant 0 : i32
    return %c0_i32, %c0_i32_0 : i32, i32
  }
  func.func @transform_5(%arg0: i32, %arg1: i32) -> (i32, i32) {
    %c0_i32 = arith.constant 0 : i32
    %c0_i32_0 = arith.constant 0 : i32
    return %arg0, %c0_i32 : i32, i32
  }
}

</mosaic_0001>

<bundles_post_ra>
// kernel: tpu_custom_call.1
= control target key start
LH: loop header
LB: loop body
LE: loop exit
PB: predicated region body
PF: predicated region fallthrough
CT: control target
= control target key end

     0   :  { %vm25_vm0 = vcmask 261120   ;;  %s459_s0 = inlined_call_operand.vmem [shape: f32[16,32], index: 0, kind: input, shape index: {}]   ;;  %s460_s1 = inlined_call_operand.vmem [shape: f32[32,64], index: 1, kind: input, shape index: {}]   ;;  %s461_s2 = inlined_call_operand.vmem [shape: f32[1,64], index: 2, kind: input, shape index: {}]   ;;  %s462_s3 = inlined_call_operand.vmem [shape: f32[64,32], index: 3, kind: input, shape index: {}]   ;;  %s463_s4 = inlined_call_operand.vmem [shape: f32[1,32], index: 4, kind: input, shape index: {}]   ;;  %s464_s5 = inlined_call_operand.hbm [shape: f32[16,32], index: 5, kind: output, shape index: {}]  }
   0x1   :  { %v30_v0 = vld [vmem:[%s460_s1] sm:$0xff]  ;;  %v31_v1 = vld [vmem:[%s460_s1 + $0x8] sm:$0xff]  ;;  %v32_v2 = vld [vmem:[%s460_s1 + $0x10] sm:$0xff] }
   0x2   :  { %v305_v3 = vpack.c.bf16 %v31_v1, %v30_v0  ;;  %v33_v4 = vld [vmem:[%s460_s1 + $0x18] sm:$0xff]  ;;  %v28_v5 = vld [vmem:[%s459_s0] sm:$0xff]  ;;  %v128_v8 = vld [vmem:[%s462_s3 + $0x8] sm:$0xff] }
   0x3   :  { %v309_v6 = vpack.c.bf16 %v33_v4, %v32_v2  ;;  %283 = vmatprep.mubr.msk.f32.mxu0 %vm25_vm0, %v28_v5  ;;  %v127_v7 = vld [vmem:[%s462_s3] sm:$0xff]  ;;  %v129_v9 = vld [vmem:[%s462_s3 + $0x10] sm:$0xff]  ;;  %v130_v11 = vld [vmem:[%s462_s3 + $0x18] sm:$0xff] }
   0x4   :  { %306 = vmatprep.subr.bf16.mxu0 %v305_v3  ;;  %v313_v10 = vpack.c.bf16 %v128_v8, %v127_v7  ;;  %v317_v12 = vpack.c.bf16 %v130_v11, %v129_v9  ;;  %v131_v13 = vld [vmem:[%s462_s3 + $0x20] sm:$0xff]  ;;  %v132_v14 = vld [vmem:[%s462_s3 + $0x28] sm:$0xff] }
   0x5   :  { %308 = vmatpush3.bf16.msra.mxu0 %v305_v3 }
   0x6   :  { %10 = vsyncpa [#allocation4], 0  ;;  %310 = vmatprep.subr.bf16.mxu0 %v309_v6  ;;  %314 = vmatprep.subr.bf16.mxu1 %v313_v10  ;;  %v321_v15 = vpack.c.bf16 %v132_v14, %v131_v13  ;;  %v29_v16 = vld [vmem:[%s459_s0 + $0x8] sm:$0xff]  ;;  %v133_v17 = vld [vmem:[%s462_s3 + $0x30] sm:$0xff]  ;;  %v357_v20 = vmov 0.0   ;;  %vm135_vm1 = vcmask 523264  }
   0x7   :  { %316 = vmatpush3.bf16.msra.mxu1 %v313_v10  ;;  %v134_v18 = vld [vmem:[%s462_s3 + $0x38] sm:$0xff]  ;;  %27 = vst.msk [vmem:[#allocation2 + $0x8] sm:$0xff] %vm25_vm0, %v357_v20  ;;  %26 = vst.msk [vmem:[#allocation2] sm:$0xff] %vm25_vm0, %v357_v20  ;;  %v253_v21 = vld [vmem:[%s461_s2] ss:$0 sm:$0xff]  ;;  %s358_s21 = smov [#allocation3]  }
   0x8   :  { %318 = vmatprep.subr.bf16.mxu1 %v317_v12  ;;  %v325_v19 = vpack.c.bf16 %v134_v18, %v133_v17  ;;  %v258_v34 = vld [vmem:[%s463_s4] ss:$0 sm:$0xff]  ;;  %s242_s22 = sshll.u32 %s358_s21, 4  ;;  %s243_s22 = int_to_ptr.vmem [resolvable:$true] %s242_s22 }
   0x9   :  { %312 = vmatpush3.bf16.msra.mxu0 %v309_v6  ;;  %s333_s23 = scalar_lea.vmem %s243_s22, 256  ;;  %p338_p1 = scmp.lt.s32.totalorder %s243_s22, %s243_s22 }
   0xa   :  { %p334_p0 = scmp.ne.s32.totalorder %s243_s22, %s333_s23  ;;  %p339_p2 = scmp.lt.s32.totalorder %s333_s23, %s333_s23 }
   0xb   :  { %320 = vmatpush3.bf16.msra.mxu1 %v317_v12 }
   0xc   :  { %284 = vmatmul.mubr.msk.f32.vlgmr.msra.gmra.mrb[0].mxu0 %vm25_vm0, %v29_v16  ;;  %322 = vmatprep.subr.bf16.mxu1 %v321_v15  ;;  %p340_p3 = por %p339_p2, %p338_p1 }
   0xe   :  { %v126_v28 = vld [vmem:[#allocation2 + $0x8] sm:$0xff]  ;;  %v125_v29 = vld [vmem:[#allocation2] sm:$0xff]  ;;  %p341_p4 = pnand %p340_p3, %p334_p0 }
   0xf   :  { %324 = vmatpush3.bf16.msra.mxu1 %v321_v15 }
  0x10   :  { %326 = vmatprep.subr.bf16.mxu1 %v325_v19 }
  0x13   :  { %328 = vmatpush3.bf16.msra.mxu1 %v325_v19 }
  0xdf   :  { %v285_v22 = vpop.f32.mrb[0].mxu0 }
  0xe0   :  { %v120_v23 = vadd.f32 %v285_v22, %v253_v21  ;;  %v114_v24 = vpop.f32.mrb[1].mxu0 }
  0xe1   :  { %v115_v25 = vadd.f32 %v253_v21, %v114_v24 }
  0xe2   :  { %v124_v27 = vmax.f32 %v120_v23, 0.0 }
  0xe3   :  { %v123_v26 = vmax.f32 %v115_v25, 0.0 }
  0xe5   :  { %302 = vmatprep.mubr.msk.f32.mxu1 %vm135_vm1, %v123_v26 }
  0xe6   :  { %303 = vmatmul.mubr.msk.f32.vlgmr.msra.gmra.mrb[0].mxu1 %vm135_vm1, %v124_v27 }
 0x1b9   :  { %v304_v30 = vpop.f32.mrb[0].mxu1 }
 0x1ba   :  { %v218_v31 = vadd.f32 %v304_v30, %v126_v28  ;;  %v208_v32 = vpop.f32.mrb[1].mxu1 }
 0x1bb   :  { %v217_v33 = vadd.f32 %v208_v32, %v125_v29 }
 0x1bc   :  { %220 = vst.msk [vmem:[#allocation2 + $0x8] sm:$0xff] %vm25_vm0, %v218_v31 }
 0x1bd   :  { %219 = vst.msk [vmem:[#allocation2] sm:$0xff] %vm25_vm0, %v217_v33 }
 0x1c3   :  { %v225_v35 = vld [vmem:[#allocation2 + $0x8] sm:$0xff] }
 0x1c4   :  { %v224_v36 = vld [vmem:[#allocation2] sm:$0xff]  ;;  %v234_v37 = vadd.f32 %v258_v34, %v225_v35 }
 0x1c5   :  { %v233_v38 = vadd.f32 %v258_v34, %v224_v36 }
 0x1c6   :  { %236 = vst.msk [vmem:[#allocation3 + $0x8] sm:$0xff] %vm25_vm0, %v234_v37 }
 0x1c7   :  { %235 = vst.msk [vmem:[#allocation3] sm:$0xff] %vm25_vm0, %v233_v38 }
 0x1c8   :  { %344 = shalt.err (!%p341_p4)
}
 0x1c9   :  { %s345_s25 = scalar_lea.hbm %s464_s5, 256 }
 0x1ca   :  { %p346_p5 = scmp.ne.s32.totalorder %s464_s5, %s345_s25  ;;  %p349_p6 = scmp.lt.u32.totalorder %s345_s25, %s464_s5 }
 0x1cc   :  { %p351_p7 = pnand %p349_p6, %p346_p5 }
 0x1ce   :  { %354 = shalt.err (!%p351_p7)
}
 0x1cf   :  { %s359_s30 = smov 128   ;;  %s360_s6 = smov 8  }
 0x1d0   :  { %248 = dma.vmem_to_hbm [thread:$0]  %s243_s22, 256, %s464_s5, [#allocation4], %s359_s30, %s359_s30, %s360_s6  }
 0x1d1   :  { %355 = dma.done.wait [#allocation4], 256  }
 0x1d2   :  { %356 = vsyncadd [#allocation4], 4294967040 }
 0x1d3   :  { %252 = vsyncpa [#allocation4], 1 }

</bundles_post_ra>
